<compile_context>
chip_gen: v5e
topology: v5e:2x2
jax: 0.10.0
libtpu: 0.0.40
codegen_flags: <defaults>
</compile_context>

<pallas_src>
import jax
import jax.numpy as jnp
from jax.experimental import pallas as pl
from jax.experimental.pallas import tpu as pltpu

_LANE = 128      # vreg lane width
_SUBLANE = 8     # f32 sublane count
_NEG_INF = -1e30  # bias value for padded label columns -> exp() underflows to 0


def _round_up(n, m):
    return ((n + m - 1) // m) * m


def _pad_to(a, shape, value=0.0):
    pads = [(0, t - s) for s, t in zip(a.shape, shape)]
    if all(p == (0, 0) for p in pads):
        return a
    return jnp.pad(a, pads, constant_values=value)


def mlp_kernel(x_ref, w1_ref, b1_ref, w2_ref, b2_ref, o_ref):
    # fc1 + sigmoid: MXU matmul (f32 accumulation) + EUP sigmoid, all f32 after.
    h = jnp.dot(x_ref[...], w1_ref[...], preferred_element_type=jnp.float32)
    h = jax.nn.sigmoid(h + b1_ref[...])          # b1 is (1, H_pad), broadcasts
    # fc2: cast activations to the weight dtype (no-op for f32, bf16 for bf16 path).
    logits = jnp.dot(h.astype(w2_ref.dtype), w2_ref[...],
                     preferred_element_type=jnp.float32)
    logits = logits + b2_ref[...]                # padded labels carry -1e30 bias
    # numerically stable softmax over the (padded, lane-dense) label axis
    m = jnp.max(logits, axis=-1, keepdims=True)
    e = jnp.exp(logits - m)
    denom = jnp.sum(e, axis=-1, keepdims=True)
    # EUP approximate reciprocal + one Newton step -> ~f32 accuracy, no divide.
    r = pl.reciprocal(denom, approx=True)
    r = r * (2.0 - denom * r)
    o_ref[...] = (e * r).astype(o_ref.dtype)


def mlp_forward(x, w1, b1, w2, b2, *, block_batch=256,
                compute_dtype=jnp.float32):
    """x: [B, F], w1: [F, H], b1: [1, H], w2: [H, L], b2: [1, L] -> [B, L] f32.

    Weights are stored pre-transposed as [in_dim, out_dim] (PyTorch nn.Linear
    stores [out, in]); the kernel computes softmax(sigmoid(x@W1+b1)@W2+b2).
    """
    B, F = x.shape
    H = w1.shape[1]
    L = w2.shape[1]

    # Lane-dense / MXU-friendly padded dims.
    F_pad = _round_up(F, _LANE)
    H_pad = _round_up(H, _LANE)
    L_pad = _round_up(L, _LANE)

    # Batch tile: multiple of the f32 sublane count, capped by block_batch.
    TB = max(_SUBLANE, min(block_batch, _round_up(B, _SUBLANE)))
    TB = _round_up(TB, _SUBLANE)
    B_pad = _round_up(B, TB)

    # Pad + cast operands. Zero-padded feature rows of W1 / hidden rows of W2
    # kill any contribution from padded lanes; padded label columns get a
    # -1e30 bias so they vanish in the softmax denominator.
    xp = _pad_to(x, (B_pad, F_pad)).astype(compute_dtype)
    w1p = _pad_to(w1, (F_pad, H_pad)).astype(compute_dtype)
    b1p = _pad_to(b1, (1, H_pad)).astype(jnp.float32)
    w2p = _pad_to(w2, (H_pad, L_pad)).astype(compute_dtype)
    b2p = _pad_to(b2.astype(jnp.float32), (1, L_pad), value=_NEG_INF)

    grid = (B_pad // TB,)

    out = pl.pallas_call(
        mlp_kernel,
        out_shape=jax.ShapeDtypeStruct((B_pad, L_pad), jnp.float32),
        grid_spec=pltpu.PrefetchScalarGridSpec(
            num_scalar_prefetch=0,
            grid=grid,
            in_specs=[
                pl.BlockSpec((TB, F_pad), lambda i: (i, 0)),      # x: batch-tiled
                pl.BlockSpec((F_pad, H_pad), lambda i: (0, 0)),   # W1: resident
                pl.BlockSpec((1, H_pad), lambda i: (0, 0)),       # b1: resident
                pl.BlockSpec((H_pad, L_pad), lambda i: (0, 0)),   # W2: resident
                pl.BlockSpec((1, L_pad), lambda i: (0, 0)),       # b2: resident
            ],
            out_specs=pl.BlockSpec((TB, L_pad), lambda i: (i, 0)),
        ),
        compiler_params=pltpu.CompilerParams(
            # independent batch tiles -> both TensorCores on v7x
            dimension_semantics=("parallel",),
            # explicit scoped-VMEM budget with headroom (v7x physical = 64 MiB)
            vmem_limit_bytes=32 * 1024 * 1024,
        ),
    )(xp, w1p, b1p, w2p, b2p)

    return out[:B, :L]


def init_params(key, num_features, num_labels, n_neurons):
    # Deterministic, PyTorch-Linear-like uniform init U(-1/sqrt(fan_in), 1/sqrt(fan_in)).
    k1, k2, k3, k4 = jax.random.split(key, 4)
    lim1 = 1.0 / (num_features ** 0.5)
    lim2 = 1.0 / (n_neurons ** 0.5)
    w1 = jax.random.uniform(k1, (num_features, n_neurons), jnp.float32, -lim1, lim1)
    b1 = jax.random.uniform(k2, (1, n_neurons), jnp.float32, -lim1, lim1)
    w2 = jax.random.uniform(k3, (n_neurons, num_labels), jnp.float32, -lim2, lim2)
    b2 = jax.random.uniform(k4, (1, num_labels), jnp.float32, -lim2, lim2)
    return w1, b1, w2, b2


def mlp_reference(x, w1, b1, w2, b2):
    h = jax.nn.sigmoid(x @ w1 + b1)
    logits = h @ w2 + b2
    return jax.nn.softmax(logits, axis=-1)


if __name__ == "__main__":
    num_features, num_labels, n_neurons = 16, 8, 32
    batch = 8

    key = jax.random.PRNGKey(0)
    kx, kp = jax.random.split(key)
    x = jax.random.normal(kx, (batch, num_features), jnp.float32)
    w1, b1, w2, b2 = init_params(kp, num_features, num_labels, n_neurons)

    ref = mlp_reference(x, w1, b1, w2, b2)

    # f32 path: matches the PyTorch module numerics tightly.
    out = jax.block_until_ready(mlp_forward(x, w1, b1, w2, b2))
    assert out.shape == (batch, num_labels)
    assert jnp.allclose(out, ref, atol=1e-5, rtol=1e-5), "mismatch vs reference (f32)"
    assert jnp.allclose(jnp.sum(out, axis=-1), 1.0, atol=1e-5), "softmax rows must sum to 1"

    # bf16 MXU-input path: halves weight/activation traffic, f32 accumulation.
    out_bf16 = jax.block_until_ready(
        mlp_forward(x, w1, b1, w2, b2, compute_dtype=jnp.bfloat16))
    assert out_bf16.shape == (batch, num_labels)
    assert jnp.allclose(out_bf16, ref, atol=2e-2), "mismatch vs reference (bf16)"
    assert jnp.allclose(jnp.sum(out_bf16, axis=-1), 1.0, atol=1e-5), "softmax rows must sum to 1"

    print("KERNEL_OK")
</pallas_src>

<mosaic_0001>
module attributes {stable_mosaic.version = 11 : i64} {
  func.func @mlp_kernel(%arg0: i32, %arg1: memref<8x128xf32, #tpu.memory_space<vmem>>, %arg2: memref<128x128xf32, #tpu.memory_space<vmem>>, %arg3: memref<1x128xf32, #tpu.memory_space<vmem>>, %arg4: memref<128x128xf32, #tpu.memory_space<vmem>>, %arg5: memref<1x128xf32, #tpu.memory_space<vmem>>, %arg6: memref<8x128xf32, #tpu.memory_space<vmem>>) attributes {dimension_semantics = [#tpu.dimension_semantics<parallel>], iteration_bounds = array<i64: 1>, scalar_prefetch = 0 : i64, scratch_operands = 0 : i64, tpu.core_type = #tpu.core_type<tc>, window_params = [{transform_indices = @transform_0, window_bounds = array<i64: 8, 128>}, {pipeline_mode = #tpu.pipeline_mode<synchronous>, transform_indices = @transform_1, window_bounds = array<i64: 128, 128>}, {pipeline_mode = #tpu.pipeline_mode<synchronous>, transform_indices = @transform_2, window_bounds = array<i64: 1, 128>}, {pipeline_mode = #tpu.pipeline_mode<synchronous>, transform_indices = @transform_3, window_bounds = array<i64: 128, 128>}, {pipeline_mode = #tpu.pipeline_mode<synchronous>, transform_indices = @transform_4, window_bounds = array<i64: 1, 128>}, {transform_indices = @transform_5, window_bounds = array<i64: 8, 128>}]} {
    %c0 = arith.constant 0 : index
    %c0_0 = arith.constant 0 : index
    %0 = vector.load %arg1[%c0, %c0_0] : memref<8x128xf32, #tpu.memory_space<vmem>>, vector<8x128xf32>
    %c0_1 = arith.constant 0 : index
    %c0_2 = arith.constant 0 : index
    %1 = vector.load %arg2[%c0_1, %c0_2] : memref<128x128xf32, #tpu.memory_space<vmem>>, vector<128x128xf32>
    %cst = arith.constant dense<0.000000e+00> : vector<8x128xf32>
    %2 = tpu.matmul %0, %1, %cst {dimension_numbers = #tpu.dot_dimension_numbers<[1], [0], [0], [1], [0, 0, 1, 1], [], []>} : vector<8x128xf32>, vector<128x128xf32>, vector<8x128xf32> -> vector<8x128xf32>
    %c0_3 = arith.constant 0 : index
    %c0_4 = arith.constant 0 : index
    %3 = vector.load %arg3[%c0_3, %c0_4] : memref<1x128xf32, #tpu.memory_space<vmem>>, vector<1x128xf32>
    %4 = vector.broadcast %3 : vector<1x128xf32> to vector<8x128xf32>
    %5 = arith.addf %2, %4 : vector<8x128xf32>
    %6 = arith.negf %5 : vector<8x128xf32>
    %7 = math.exp %6 : vector<8x128xf32>
    %cst_5 = arith.constant 1.000000e+00 : f32
    %8 = vector.broadcast %cst_5 : f32 to vector<8x128xf32>
    %9 = arith.addf %8, %7 : vector<8x128xf32>
    %10 = arith.divf %8, %9 : vector<8x128xf32>
    %c0_6 = arith.constant 0 : index
    %c0_7 = arith.constant 0 : index
    %11 = vector.load %arg4[%c0_6, %c0_7] : memref<128x128xf32, #tpu.memory_space<vmem>>, vector<128x128xf32>
    %cst_8 = arith.constant dense<0.000000e+00> : vector<8x128xf32>
    %12 = tpu.matmul %10, %11, %cst_8 {dimension_numbers = #tpu.dot_dimension_numbers<[1], [0], [0], [1], [0, 0, 1, 1], [], []>} : vector<8x128xf32>, vector<128x128xf32>, vector<8x128xf32> -> vector<8x128xf32>
    %c0_9 = arith.constant 0 : index
    %c0_10 = arith.constant 0 : index
    %13 = vector.load %arg5[%c0_9, %c0_10] : memref<1x128xf32, #tpu.memory_space<vmem>>, vector<1x128xf32>
    %14 = vector.broadcast %13 : vector<1x128xf32> to vector<8x128xf32>
    %15 = arith.addf %12, %14 : vector<8x128xf32>
    %cst_11 = arith.constant dense<0xFF800000> : vector<8xf32>
    %16 = vector.multi_reduction <maximumf>, %15, %cst_11 [1] : vector<8x128xf32> to vector<8xf32>
    %17 = vector.shape_cast %16 : vector<8xf32> to vector<8x1xf32>
    %18 = vector.broadcast %17 : vector<8x1xf32> to vector<8x128xf32>
    %19 = arith.subf %15, %18 : vector<8x128xf32>
    %20 = math.exp %19 : vector<8x128xf32>
    %cst_12 = arith.constant dense<0.000000e+00> : vector<8xf32>
    %21 = vector.multi_reduction <add>, %20, %cst_12 [1] : vector<8x128xf32> to vector<8xf32>
    %22 = vector.shape_cast %21 : vector<8xf32> to vector<8x1xf32>
    %23 = tpu.reciprocal %22 {approx = true} : vector<8x1xf32> -> vector<8x1xf32>
    %24 = arith.mulf %22, %23 : vector<8x1xf32>
    %cst_13 = arith.constant 2.000000e+00 : f32
    %25 = vector.broadcast %cst_13 : f32 to vector<8x1xf32>
    %26 = arith.subf %25, %24 : vector<8x1xf32>
    %27 = arith.mulf %23, %26 : vector<8x1xf32>
    %28 = vector.broadcast %27 : vector<8x1xf32> to vector<8x128xf32>
    %29 = arith.mulf %20, %28 : vector<8x128xf32>
    %c0_14 = arith.constant 0 : index
    %c0_15 = arith.constant 0 : index
    %30 = vector.load %arg6[%c0_14, %c0_15] : memref<8x128xf32, #tpu.memory_space<vmem>>, vector<8x128xf32>
    tpu.vector_store %arg6[%c0_14, %c0_15], %29 {strides = array<i32>} : memref<8x128xf32, #tpu.memory_space<vmem>>, vector<8x128xf32>,
    return
  }
  func.func @transform_0(%arg0: i32) -> (i32, i32) {
    %c0_i32 = arith.constant 0 : i32
    %c0_i32_0 = arith.constant 0 : i32
    return %arg0, %c0_i32 : i32, i32
  }
  func.func @transform_1(%arg0: i32) -> (i32, i32) {
    %c0_i32 = arith.constant 0 : i32
    %c0_i32_0 = arith.constant 0 : i32
    %c0_i32_1 = arith.constant 0 : i32
    return %c0_i32, %c0_i32_0 : i32, i32
  }
  func.func @transform_2(%arg0: i32) -> (i32, i32) {
    %c0_i32 = arith.constant 0 : i32
    %c0_i32_0 = arith.constant 0 : i32
    %c0_i32_1 = arith.constant 0 : i32
    return %c0_i32, %c0_i32_0 : i32, i32
  }
  func.func @transform_3(%arg0: i32) -> (i32, i32) {
    %c0_i32 = arith.constant 0 : i32
    %c0_i32_0 = arith.constant 0 : i32
    %c0_i32_1 = arith.constant 0 : i32
    return %c0_i32, %c0_i32_0 : i32, i32
  }
  func.func @transform_4(%arg0: i32) -> (i32, i32) {
    %c0_i32 = arith.constant 0 : i32
    %c0_i32_0 = arith.constant 0 : i32
    %c0_i32_1 = arith.constant 0 : i32
    return %c0_i32, %c0_i32_0 : i32, i32
  }
  func.func @transform_5(%arg0: i32) -> (i32, i32) {
    %c0_i32 = arith.constant 0 : i32
    %c0_i32_0 = arith.constant 0 : i32
    return %arg0, %c0_i32 : i32, i32
  }
}

</mosaic_0001>

<bundles_post_ra>
// kernel: tpu_custom_call.1
= control target key start
LH: loop header
LB: loop body
LE: loop exit
PB: predicated region body
PF: predicated region fallthrough
CT: control target
= control target key end

     0   :  { %10 = vsyncpa [#allocation3], 0  ;;  %s370_s0 = inlined_call_operand.hbm [shape: f32[8,128], index: 0, kind: input, shape index: {}]   ;;  %s371_s1 = inlined_call_operand.hbm [shape: f32[128,128], index: 1, kind: input, shape index: {}]   ;;  %s372_s2 = inlined_call_operand.vmem [shape: f32[1,128], index: 2, kind: input, shape index: {}]   ;;  %s373_s3 = inlined_call_operand.hbm [shape: f32[128,128], index: 3, kind: input, shape index: {}]   ;;  %s374_s4 = inlined_call_operand.vmem [shape: f32[1,128], index: 4, kind: input, shape index: {}]   ;;  %s375_s5 = inlined_call_operand.hbm [shape: f32[8,128], index: 5, kind: output, shape index: {}]  }
   0x1   :  { %11 = vsyncpa [#allocation6], 0  ;;  %s28_s20 = sshll.u32 %s371_s1, 4  ;;  %s29_s20 = int_to_ptr.hbm [resolvable:$true] %s28_s20 }
   0x2   :  { %12 = vsyncpa [#allocation4], 0  ;;  %s316_s21 = smov [#allocation5]   ;;  %s18_s25 = sshll.u32 %s370_s0, 4  ;;  %s19_s25 = int_to_ptr.hbm [resolvable:$true] %s18_s25 }
   0x3   :  { %s30_s22 = sshll.u32 %s316_s21, 4  ;;  %s317_s26 = smov 128   ;;  %s31_s22 = int_to_ptr.vmem [resolvable:$true] %s30_s22 }
   0x4   :  { %s318_s27 = smov 8   ;;  %s319_s28 = smov [#allocation2]  }
   0x5   :  { %36 = dma.hbm_to_vmem [thread:$0]  %s29_s20, 2048, %s31_s22, [#allocation6], %s317_s26, %s317_s26, %s318_s27  }
   0x6   :  { %s20_s29 = sshll.u32 %s319_s28, 4  ;;  %s43_s7 = sshll.u32 %s373_s3, 4  ;;  %s21_s29 = int_to_ptr.vmem [resolvable:$true] %s20_s29  ;;  %s44_s7 = int_to_ptr.hbm [resolvable:$true] %s43_s7 }
   0x7   :  { %23 = dma.hbm_to_vmem [thread:$0]  %s19_s25, 128, %s21_s29, [#allocation3]  }
   0x8   :  { %s320_s1 = smov [#allocation7]  }
   0x9   :  { %s45_s8 = sshll.u32 %s320_s1, 4  ;;  %s46_s8 = int_to_ptr.vmem [resolvable:$true] %s45_s8 }
   0xa   :  { %51 = dma.hbm_to_vmem [thread:$0]  %s44_s7, 2048, %s46_s8, [#allocation6], %s317_s26, %s317_s26, %s318_s27  }
   0xb   :  { %310 = dma.done.wait [#allocation3], 128  }
   0xc   :  { %311 = vsyncadd [#allocation3], 4294967168 }
   0xd   :  { %312 = dma.done.wait [#allocation6], 4096  }
   0xe   :  { %313 = vsyncadd [#allocation6], 4294963200  ;;  %v82_v0 = vld [vmem:[#allocation5 + $0x78] sm:$0xff]  ;;  %v81_v1 = vld [vmem:[#allocation5 + $0x70] sm:$0xff]  ;;  %s321_s10 = smov [#allocation8]  }
   0xf   :  { %87 = vmatpush.msra.mxu0 %v82_v0  ;;  %v80_v2 = vld [vmem:[#allocation5 + $0x68] sm:$0xff]  ;;  %v79_v3 = vld [vmem:[#allocation5 + $0x60] sm:$0xff]  ;;  %v78_v4 = vld [vmem:[#allocation5 + $0x58] sm:$0xff]  ;;  %s184_s11 = sshll.u32 %s321_s10, 4  ;;  %s185_s11 = int_to_ptr.vmem [resolvable:$true] %s184_s11 }
  0x10   :  { %v77_v5 = vld [vmem:[#allocation5 + $0x50] sm:$0xff]  ;;  %v76_v6 = vld [vmem:[#allocation5 + $0x48] sm:$0xff]  ;;  %v75_v7 = vld [vmem:[#allocation5 + $0x40] sm:$0xff] }
  0x11   :  { %88 = vmatpush.msra.mxu0 %v81_v1  ;;  %v74_v8 = vld [vmem:[#allocation5 + $0x38] sm:$0xff]  ;;  %v73_v9 = vld [vmem:[#allocation5 + $0x30] sm:$0xff]  ;;  %v72_v10 = vld [vmem:[#allocation5 + $0x28] sm:$0xff] }
  0x12   :  { %v71_v11 = vld [vmem:[#allocation5 + $0x20] sm:$0xff]  ;;  %v70_v12 = vld [vmem:[#allocation5 + $0x18] sm:$0xff]  ;;  %v69_v13 = vld [vmem:[#allocation5 + $0x10] sm:$0xff] }
  0x13   :  { %89 = vmatpush.msra.mxu0 %v80_v2  ;;  %v68_v14 = vld [vmem:[#allocation5 + $0x8] sm:$0xff]  ;;  %v67_v15 = vld [vmem:[#allocation5] sm:$0xff]  ;;  %v66_v16 = vld [vmem:[#allocation2] sm:$0xff] }
  0x14   :  { %v141_v17 = vld [vmem:[#allocation7 + $0x78] sm:$0xff]  ;;  %v140_v18 = vld [vmem:[#allocation7 + $0x70] sm:$0xff]  ;;  %v139_v19 = vld [vmem:[#allocation7 + $0x68] sm:$0xff] }
  0x15   :  { %90 = vmatpush.msra.mxu0 %v79_v3  ;;  %146 = vmatpush.msra.mxu1 %v141_v17  ;;  %v138_v20 = vld [vmem:[#allocation7 + $0x60] sm:$0xff]  ;;  %v137_v21 = vld [vmem:[#allocation7 + $0x58] sm:$0xff]  ;;  %v136_v22 = vld [vmem:[#allocation7 + $0x50] sm:$0xff] }
  0x16   :  { %v135_v23 = vld [vmem:[#allocation7 + $0x48] sm:$0xff]  ;;  %v134_v24 = vld [vmem:[#allocation7 + $0x40] sm:$0xff]  ;;  %v133_v25 = vld [vmem:[#allocation7 + $0x38] sm:$0xff] }
  0x17   :  { %91 = vmatpush.msra.mxu0 %v78_v4  ;;  %147 = vmatpush.msra.mxu1 %v140_v18  ;;  %v132_v26 = vld [vmem:[#allocation7 + $0x30] sm:$0xff]  ;;  %v131_v27 = vld [vmem:[#allocation7 + $0x28] sm:$0xff]  ;;  %v130_v28 = vld [vmem:[#allocation7 + $0x20] sm:$0xff] }
  0x18   :  { %v129_v29 = vld [vmem:[#allocation7 + $0x18] sm:$0xff]  ;;  %v128_v30 = vld [vmem:[#allocation7 + $0x10] sm:$0xff]  ;;  %v127_v31 = vld [vmem:[#allocation7 + $0x8] sm:$0xff] }
  0x19   :  { %92 = vmatpush.msra.mxu0 %v77_v5  ;;  %148 = vmatpush.msra.mxu1 %v139_v19  ;;  %v126_v32 = vld [vmem:[#allocation7] sm:$0xff]  ;;  %v204_v33 = vld [vmem:[%s372_s2] ss:$0 sm:$0xff] }
  0x1a   :  { %v205_v49 = vld [vmem:[%s374_s4] ss:$0 sm:$0xff]  ;;  %s186_s4 = sshll.u32 %s375_s5, 4  ;;  %s187_s4 = int_to_ptr.hbm [resolvable:$true] %s186_s4 }
  0x1b   :  { %93 = vmatpush.msra.mxu0 %v76_v6  ;;  %149 = vmatpush.msra.mxu1 %v138_v20 }
  0x1d   :  { %94 = vmatpush.msra.mxu0 %v75_v7  ;;  %150 = vmatpush.msra.mxu1 %v137_v21 }
  0x1f   :  { %95 = vmatpush.msra.mxu0 %v74_v8  ;;  %151 = vmatpush.msra.mxu1 %v136_v22 }
  0x21   :  { %96 = vmatpush.msra.mxu0 %v73_v9  ;;  %152 = vmatpush.msra.mxu1 %v135_v23 }
  0x23   :  { %97 = vmatpush.msra.mxu0 %v72_v10  ;;  %153 = vmatpush.msra.mxu1 %v134_v24 }
  0x25   :  { %98 = vmatpush.msra.mxu0 %v71_v11  ;;  %154 = vmatpush.msra.mxu1 %v133_v25 }
  0x27   :  { %99 = vmatpush.msra.mxu0 %v70_v12  ;;  %155 = vmatpush.msra.mxu1 %v132_v26 }
  0x29   :  { %100 = vmatpush.msra.mxu0 %v69_v13  ;;  %156 = vmatpush.msra.mxu1 %v131_v27 }
  0x2b   :  { %101 = vmatpush.msra.mxu0 %v68_v14  ;;  %157 = vmatpush.msra.mxu1 %v130_v28 }
  0x2d   :  { %102 = vmatpush.msra.mxu0 %v67_v15  ;;  %158 = vmatpush.msra.mxu1 %v129_v29 }
  0x2e   :  { %103 = vmatmul.f32.vlgmr.msra.gmra.mxu0 %v66_v16 }
  0x2f   :  { %159 = vmatpush.msra.mxu1 %v128_v30 }
  0x31   :  { %160 = vmatpush.msra.mxu1 %v127_v31 }
  0x33   :  { %161 = vmatpush.msra.mxu1 %v126_v32 }
  0xab   :  { %v104_v34 = vpop.f32.mrf.mxu0 }
  0xac   :  { %v105_v35 = vadd.f32 %v204_v33, %v104_v34 }
  0xae   :  { %v197_v36 = vmul.f32 -1.442695, %v105_v35 }
  0xb0   :  { %206 = vpow2.f32 %v197_v36 }
  0xb6   :  { %v207_v37 = vpop.eup %206 }
  0xb7   :  { %v110_v38 = vadd.f32 1.0, %v207_v37 }
  0xb9   :  { %208 = vrcp.f32 %v110_v38  ;;  %v122_v42 = vand.u32 2147483648, %v110_v38  ;;  %v120_v44 = vand.u32 2147483647, %v110_v38  ;;  %vm116_vm1 = vweird.f32 %v110_v38 }
  0xbb   :  { %v123_v46 = vor.u32 1.1754944e-38, %v122_v42  ;;  %vm121_vm3 = vcmp.eq.f32.partialorder %v120_v44, 8.507059e+37 }
  0xbf   :  { %v209_v39 = vpop.eup %208 }
  0xc0   :  { %v112_v40 = vmul.f32 %v209_v39, %v110_v38  ;;  %vm117_vm0 = vweird.f32 %v209_v39 }
  0xc1   :  { %vm118_vm2 = vmor %vm116_vm1, %vm117_vm0 }
  0xc2   :  { %v113_v41 = vsub.f32 1.0, %v112_v40 }
  0xc4   :  { %v114_v43 = vmul.f32 %v209_v39, %v113_v41 }
  0xc6   :  { %v115_v45 = vadd.f32 %v209_v39, %v114_v43 }
  0xc8   :  { %v119_v47 = vsel %vm118_vm2, %v209_v39, %v115_v45 }
  0xc9   :  { %v124_v48 = vsel %vm121_vm3, %v123_v46, %v119_v47 }
  0xca   :  { %162 = vmatmul.f32.vlgmr.msra.gmra.mxu1 %v124_v48 }
 0x147   :  { %v163_v50 = vpop.f32.mrf.mxu1 }
 0x148   :  { %v164_v51 = vadd.f32 %v205_v49, %v163_v50 }
 0x14a   :  { %166 = vmax.xlane.f32.xlu0 %v164_v51 }
 0x1bd   :  { %v167_v52 = vpop.xlane.xlu0 %166 }
 0x1be   :  { %v168_v53 = vsub.f32 %v164_v51, %v167_v52 }
 0x1c0   :  { %v169_v54 = vmul.f32 1.442695, %v168_v53 }
 0x1c2   :  { %210 = vpow2.f32 %v169_v54 }
 0x1c8   :  { %v211_v55 = vpop.eup %210 }
 0x1c9   :  { %171 = vadd.xlane.f32.xlu0 %v211_v55 }
 0x23c   :  { %v172_v56 = vpop.xlane.xlu0 %171 }
 0x23d   :  { %212 = vrcp.f32 %v172_v56 }
 0x243   :  { %v213_v57 = vpop.eup %212 }
 0x244   :  { %v174_v58 = vmul.f32 %v213_v57, %v172_v56 }
 0x246   :  { %v175_v59 = vsub.f32 2.0, %v174_v58 }
 0x248   :  { %v176_v60 = vmul.f32 %v213_v57, %v175_v59 }
 0x24a   :  { %v177_v61 = vmul.f32 %v211_v55, %v176_v60 }
 0x24c   :  { %178 = vst [vmem:[#allocation8] sm:$0xff] %v177_v61 }
 0x24d   :  { %189 = dma.vmem_to_hbm [thread:$0]  %s185_s11, 128, %s187_s4, [#allocation4]  }
 0x24e   :  { %314 = dma.done.wait [#allocation4], 128  }
 0x24f   :  { %315 = vsyncadd [#allocation4], 4294967168 }
 0x250   :  { %194 = vsyncpa [#allocation3], 1 }
 0x251   :  { %195 = vsyncpa [#allocation6], 1 }
 0x252   :  { %196 = vsyncpa [#allocation4], 1 }

</bundles_post_ra>
